<compile_context>
chip_gen: v5e
topology: v5e:2x2
jax: 0.10.0
libtpu: 0.0.40
codegen_flags: <defaults>
</compile_context>

<pallas_src>
import jax
import jax.numpy as jnp
from jax import lax
from jax.experimental import pallas as pl
from jax.experimental.pallas import tpu as pltpu

_LANE = 128
_SUBLANE = 8
_FULL_ROW_BYTES = 128 * 1024        # keep full rows while a row is <= 128 KiB
_WIDE_TN = 2048                     # lane tile for extremely wide inputs
_CHUNK_F32_BYTES = 128 * 1024       # bound on the f32 temp per row chunk
_SMALL_FALLBACK_ELEMS = 256 * 1024  # below this, plain XLA wins


def _round_up(x: int, m: int) -> int:
    return ((x + m - 1) // m) * m


def _per_input_block_bytes() -> int:
    """Generation-aware per-input block size (bytes)."""
    try:
        kind = jax.devices()[0].device_kind.lower()
    except Exception:
        return 2 * 1024 * 1024
    if "v7" in kind or "7x" in kind:
        return 6 * 1024 * 1024   # 2 in x 2 buf x 6 MiB = 24 MiB << 64 MiB VMEM
    if "v6" in kind:
        return 4 * 1024 * 1024   # 16 MiB of DMA windows fits the 32 MiB default
    return 2 * 1024 * 1024       # v5e & others: stay inside 16 MiB scoped default


def _choose_tiles(M: int, N: int, itemsize: int, block_bytes: int):
    row_gran = max(_SUBLANE, 32 // itemsize)   # 8 f32, 16 bf16, 32 int8/fp8
    n_lanes = _round_up(N, _LANE)
    TN = n_lanes if n_lanes * itemsize <= _FULL_ROW_BYTES else _WIDE_TN
    tm_budget = max(32, (block_bytes // (TN * itemsize)) // 32 * 32)
    TM = min(tm_budget, _round_up(M, row_gran))
    return TM, TN, row_gran


def _choose_chunk_rows(TM: int, TN: int, row_gran: int) -> int:
    """Rows per in-kernel chunk: bounds f32 temporaries, divides TM."""
    max_rows = max(row_gran, _CHUNK_F32_BYTES // (TN * 4))
    for cand in (256, 128, 64, 32, 16, 8):
        if cand % row_gran == 0 and cand <= max_rows and TM % cand == 0:
            return cand
    return row_gran


def _make_partial_kernel(TM, TN, CR, rem_m, rem_n, GI, GJ):
    n_chunks = TM // CR
    unroll = n_chunks <= 8

    def kernel(yt_ref, yp_ref, out_ref):
        def accumulate(mask_rows, mask_cols, row_limit=None, col_limit=None):
            # Hoist iotas out of the chunk loop (broadcasts are not CSE'd).
            col_ok = None
            row_iota = None
            if mask_cols:
                col_ok = lax.broadcasted_iota(jnp.int32, (CR, TN), 1) < col_limit
            if mask_rows:
                row_iota = lax.broadcasted_iota(jnp.int32, (CR, TN), 0)

            def chunk(c, acc):
                r0 = pl.multiple_of(c * CR, CR)
                yt = yt_ref[pl.ds(r0, CR), :].astype(jnp.float32)
                yp = yp_ref[pl.ds(r0, CR), :].astype(jnp.float32)
                d = yp - yt
                if mask_rows or mask_cols:
                    valid = None
                    if mask_rows:
                        valid = (row_iota + r0) < row_limit
                    if mask_cols:
                        valid = col_ok if valid is None else valid & col_ok
                    d = jnp.where(valid, d, 0.0)   # Huber(0) == 0
                ad = jnp.abs(d)
                q = jnp.minimum(ad, 1.0)           # branchless SmoothL1 (beta=1)
                elem = q * (ad - 0.5 * q)
                part = elem.reshape(CR // _SUBLANE, _SUBLANE, TN // _LANE, _LANE)
                return acc + part.sum(axis=(0, 2))

            acc = lax.fori_loop(
                0, n_chunks, chunk,
                jnp.zeros((_SUBLANE, _LANE), jnp.float32), unroll=unroll)
            out_ref[0, 0] = acc

        if rem_m == 0 and rem_n == 0:
            accumulate(False, False)
            return

        last_i = pl.program_id(0) == pl.num_programs(0) - 1
        last_j = pl.program_id(1) == pl.num_programs(1) - 1
        row_limit = jnp.where(last_i, rem_m, TM).astype(jnp.int32) if rem_m else None
        col_limit = jnp.where(last_j, rem_n, TN).astype(jnp.int32) if rem_n else None

        always_boundary = (rem_m and GI == 1) or (rem_n and GJ == 1)
        if always_boundary:
            accumulate(rem_m != 0, rem_n != 0, row_limit, col_limit)
            return

        conds = []
        if rem_m:
            conds.append(last_i)
        if rem_n:
            conds.append(last_j)
        boundary = conds[0] if len(conds) == 1 else jnp.logical_or(*conds)

        @pl.when(jnp.logical_not(boundary))
        def _():
            accumulate(False, False)

        @pl.when(boundary)
        def _():
            accumulate(rem_m != 0, rem_n != 0, row_limit, col_limit)

    return kernel


def _huber_mean(y_true, y_pred):
    d = y_pred.astype(jnp.float32) - y_true.astype(jnp.float32)
    ad = jnp.abs(d)
    q = jnp.minimum(ad, 1.0)
    return jnp.mean(q * (ad - 0.5 * q))


def tick_mse(y_true: jax.Array, y_pred: jax.Array, scale_factor: float,
             *, block_bytes: int | None = None,
             force_pallas: bool = False) -> jax.Array:
    """Equivalent of TickMSE.forward(y_true, y_pred) -> scalar loss."""
    assert y_true.shape == y_pred.shape
    if y_true.ndim <= 1:
        yt2 = y_true.reshape(1, -1)
        yp2 = y_pred.reshape(1, -1)
    else:
        yt2 = y_true.reshape(-1, y_true.shape[-1])
        yp2 = y_pred.reshape(-1, y_pred.shape[-1])
    M, N = yt2.shape
    total_n = M * N

    # Small-input fallback: pallas_call launch overhead would dominate.
    if total_n < _SMALL_FALLBACK_ELEMS and not force_pallas:
        return jnp.float32(scale_factor) * _huber_mean(yt2, yp2)

    is_t = jnp.dtype(yt2.dtype).itemsize
    is_p = jnp.dtype(yp2.dtype).itemsize
    itemsize = max(is_t, is_p)
    if block_bytes is None:
        block_bytes = _per_input_block_bytes()

    TM, TN, row_gran = _choose_tiles(M, N, itemsize, block_bytes)
    CR = _choose_chunk_rows(TM, TN, row_gran)
    GI, GJ = pl.cdiv(M, TM), pl.cdiv(N, TN)
    rem_m, rem_n = M % TM, N % TN

    # 2 inputs x 2 pipeline buffers per input + headroom for chunk temps.
    vmem_limit = int(2 * TM * TN * (is_t + is_p) + (8 << 20))

    kernel = _make_partial_kernel(TM, TN, CR, rem_m, rem_n, GI, GJ)

    partials = pl.pallas_call(
        kernel,
        out_shape=jax.ShapeDtypeStruct((GI, GJ, _SUBLANE, _LANE), jnp.float32),
        grid_spec=pltpu.PrefetchScalarGridSpec(
            num_scalar_prefetch=0,
            grid=(GI, GJ),
            in_specs=[
                pl.BlockSpec((TM, TN), lambda i, j: (i, j)),
                pl.BlockSpec((TM, TN), lambda i, j: (i, j)),
            ],
            out_specs=pl.BlockSpec((1, 1, _SUBLANE, _LANE),
                                   lambda i, j: (i, j, 0, 0)),
        ),
        compiler_params=pltpu.CompilerParams(
            dimension_semantics=("parallel", "parallel"),
            vmem_limit_bytes=vmem_limit,
        ),
    )(yt2, yp2)

    total = jnp.sum(partials, dtype=jnp.float32)
    return jnp.float32(scale_factor) * (total / jnp.float32(total_n))


def _tick_mse_ref(y_true, y_pred, scale_factor):
    d = y_pred.astype(jnp.float32) - y_true.astype(jnp.float32)
    ad = jnp.abs(d)
    elem = jnp.where(ad < 1.0, 0.5 * d * d, ad - 0.5)
    return jnp.float32(scale_factor) * jnp.mean(elem)


if __name__ == "__main__":
    key = jax.random.PRNGKey(0)
    ks = jax.random.split(key, 8)
    scale_factor = 100.0  # constructor arg of TickMSE

    def check(yt, yp, **kw):
        out = tick_mse(yt, yp, scale_factor, **kw)
        jax.block_until_ready(out)
        ref = _tick_mse_ref(yt, yp, scale_factor)
        assert jnp.allclose(out, ref, rtol=5e-4, atol=5e-4), (out, ref)

    # 1) Small shape consistent with the module -> fused-XLA fallback path.
    yt = jax.random.normal(ks[0], (16, 128), jnp.float32)
    yp = yt + 2.0 * jax.random.normal(ks[1], (16, 128), jnp.float32)
    check(yt, yp)

    # 2) Pallas path, divisible shapes (no masking), single block.
    yt = jax.random.normal(ks[2], (512, 640), jnp.float32)
    yp = yt + 2.0 * jax.random.normal(ks[3], (512, 640), jnp.float32)
    check(yt, yp)

    # 3) Pallas path, ragged bf16 (row + col masking, native-dtype DMA).
    yt32 = jax.random.normal(ks[4], (515, 700), jnp.float32)
    yp32 = yt32 + 2.0 * jax.random.normal(ks[5], (515, 700), jnp.float32)
    check(yt32.astype(jnp.bfloat16), yp32.astype(jnp.bfloat16))

    # 4) Pallas path, forced small blocks -> multi-block grid + row masking.
    yt = jax.random.normal(ks[6], (200, 384), jnp.float32)
    yp = yt + 2.0 * jax.random.normal(ks[7], (200, 384), jnp.float32)
    check(yt, yp, force_pallas=True, block_bytes=128 * 1024)

    print("KERNEL_OK")
</pallas_src>

<mosaic_0001>
module attributes {stable_mosaic.version = 11 : i64} {
  func.func @kernel(%arg0: i32, %arg1: i32, %arg2: memref<512x640xf32, #tpu.memory_space<vmem>>, %arg3: memref<512x640xf32, #tpu.memory_space<vmem>>, %arg4: memref<1x1x8x128xf32, #tpu.memory_space<vmem>>) attributes {dimension_semantics = [#tpu.dimension_semantics<parallel>, #tpu.dimension_semantics<parallel>], iteration_bounds = array<i64: 1, 1>, scalar_prefetch = 0 : i64, scratch_operands = 0 : i64, tpu.core_type = #tpu.core_type<tc>, window_params = [{transform_indices = @transform_0, window_bounds = array<i64: 512, 640>}, {transform_indices = @transform_1, window_bounds = array<i64: 512, 640>}, {transform_indices = @transform_2, window_bounds = array<i64: 1, 1, 8, 128>}]} {
    %cst = arith.constant 0.000000e+00 : f32
    %0 = vector.broadcast %cst : f32 to vector<8x128xf32>
    %c0_i32 = arith.constant 0 : i32
    %c16_i32 = arith.constant 16 : i32
    %1 = arith.addi %c0_i32, %c16_i32 : i32
    %c1_i32 = arith.constant 1 : i32
    %2 = scf.for %arg5 = %c0_i32 to %1 step %c1_i32 iter_args(%arg6 = %0) -> (vector<8x128xf32>)  : i32 {
      %c32_i32 = arith.constant 32 : i32
      %6 = arith.muli %arg5, %c32_i32 : i32
      %7 = tpu.assume_multiple %6, 32 : i32
      %8 = arith.index_cast %7 : i32 to index
      %c0_4 = arith.constant 0 : index
      %9 = vector.load %arg2[%8, %c0_4] : memref<512x640xf32, #tpu.memory_space<vmem>>, vector<32x640xf32>
      %10 = arith.index_cast %7 : i32 to index
      %c0_5 = arith.constant 0 : index
      %11 = vector.load %arg3[%10, %c0_5] : memref<512x640xf32, #tpu.memory_space<vmem>>, vector<32x640xf32>
      %12 = arith.subf %11, %9 : vector<32x640xf32>
      %13 = math.absf %12 : vector<32x640xf32>
      %cst_6 = arith.constant 1.000000e+00 : f32
      %14 = vector.broadcast %cst_6 : f32 to vector<32x640xf32>
      %15 = arith.minimumf %13, %14 : vector<32x640xf32>
      %cst_7 = arith.constant 5.000000e-01 : f32
      %16 = vector.broadcast %cst_7 : f32 to vector<32x640xf32>
      %17 = arith.mulf %16, %15 : vector<32x640xf32>
      %18 = arith.subf %13, %17 : vector<32x640xf32>
      %19 = arith.mulf %15, %18 : vector<32x640xf32>
      %20 = vector.shape_cast %19 : vector<32x640xf32> to vector<4x8x5x128xf32>
      %cst_8 = arith.constant dense<0.000000e+00> : vector<8x128xf32>
      %21 = vector.multi_reduction <add>, %20, %cst_8 [0, 2] : vector<4x8x5x128xf32> to vector<8x128xf32>
      %22 = arith.addf %arg6, %21 : vector<8x128xf32>
      scf.yield %22 : vector<8x128xf32>
    }
    %c16_i32_0 = arith.constant 16 : i32
    %c0 = arith.constant 0 : index
    %c0_1 = arith.constant 0 : index
    %c0_2 = arith.constant 0 : index
    %c0_3 = arith.constant 0 : index
    %3 = vector.load %arg4[%c0, %c0_1, %c0_2, %c0_3] : memref<1x1x8x128xf32, #tpu.memory_space<vmem>>, vector<1x1x8x128xf32>
    %4 = vector.shape_cast %3 : vector<1x1x8x128xf32> to vector<8x128xf32>
    %5 = vector.shape_cast %2 : vector<8x128xf32> to vector<1x1x8x128xf32>
    tpu.vector_store %arg4[%c0, %c0_1, %c0_2, %c0_3], %5 {strides = array<i32>} : memref<1x1x8x128xf32, #tpu.memory_space<vmem>>, vector<1x1x8x128xf32>,
    return
  }
  func.func @transform_0(%arg0: i32, %arg1: i32) -> (i32, i32) {
    %c0_i32 = arith.constant 0 : i32
    return %arg0, %arg1 : i32, i32
  }
  func.func @transform_1(%arg0: i32, %arg1: i32) -> (i32, i32) {
    %c0_i32 = arith.constant 0 : i32
    return %arg0, %arg1 : i32, i32
  }
  func.func @transform_2(%arg0: i32, %arg1: i32) -> (i32, i32, i32, i32) {
    %c0_i32 = arith.constant 0 : i32
    %c0_i32_0 = arith.constant 0 : i32
    %c0_i32_1 = arith.constant 0 : i32
    return %arg0, %arg1, %c0_i32, %c0_i32_0 : i32, i32, i32, i32
  }
}

</mosaic_0001>

<bundles_post_ra>
// kernel: tpu_custom_call.1
= control target key start
LH: loop header
LB: loop body
LE: loop exit
PB: predicated region body
PF: predicated region fallthrough
CT: control target
= control target key end

     0   :  { %7 = vsyncpa [#allocation3], 0  ;;  %s1577_s0 = inlined_call_operand.hbm [shape: f32[512,640], index: 0, kind: input, shape index: {}]   ;;  %s1578_s1 = inlined_call_operand.hbm [shape: f32[512,640], index: 1, kind: input, shape index: {}]   ;;  %s1579_s2 = inlined_call_operand.hbm [shape: f32[1,1,8,128], index: 2, kind: output, shape index: {}]  }
   0x1   :  { %8 = vsyncpa [#allocation6], 0 }
   0x2   :  { %9 = vsyncpa [#allocation4], 0  ;;  %s14_s11 = sshll.u32 %s1577_s0, 4  ;;  %s1025_s12 = smov [#allocation2]   ;;  %s15_s11 = int_to_ptr.hbm [resolvable:$true] %s14_s11 }
   0x3   :  { %s16_s13 = sshll.u32 %s1025_s12, 4  ;;  %s27_s16 = sshll.u32 %s1578_s1, 4  ;;  %s17_s13 = int_to_ptr.vmem [resolvable:$true] %s16_s13  ;;  %s28_s16 = int_to_ptr.hbm [resolvable:$true] %s27_s16 }
   0x4   :  { %s1026_s17 = smov 640   ;;  %s1027_s18 = smov 40  }
   0x5   :  { %22 = dma.hbm_to_vmem [thread:$0]  %s15_s11, 40960, %s17_s13, [#allocation3], %s1026_s17, %s1026_s17, %s1027_s18  }
   0x6   :  { %s1028_s19 = smov [#allocation5]  }
   0x7   :  { %s29_s20 = sshll.u32 %s1028_s19, 4  ;;  %s30_s20 = int_to_ptr.vmem [resolvable:$true] %s29_s20 }
   0x8   :  { %35 = dma.hbm_to_vmem [thread:$0]  %s28_s16, 40960, %s30_s20, [#allocation6], %s1026_s17, %s1026_s17, %s1027_s18  }
   0x9   :  { %983 = dma.done.wait [#allocation3], 40960  }
   0xa   :  { %984 = vsyncadd [#allocation3], 4294926336 }
   0xb   :  { %985 = dma.done.wait [#allocation6], 40960  }
   0xc   :  { %986 = vsyncadd [#allocation6], 4294926336  ;;  %v1053_v0 = vmov 0.0   ;;  %v1055_v1 = vmov 0.0   ;;  %v1057_v2 = vmov 0.0   ;;  %v1059_v3 = vmov 0.0  }
   0xd   :  { %v1061_v4 = vmov 0.0   ;;  %v1063_v5 = vmov 0.0   ;;  %v1065_v6 = vmov 0.0   ;;  %v1067_v7 = vmov 0.0   ;;  %s1069_s0 = smov 0  }
   0xe LB: > { %1587 = vst [vmem:[#allocation11_spill] sm:$0xff] %v991_v0  ;;  %s791_s1 = sshll.u32 %s1023_s0, 5  ;;  %v1029_v38 = vmov 1983009808   ;;  %vm227_vm0 = vcmask 1047556   ;;  %vm603_vm1 = vcmask 1044480   ;;  %s1023_s0 = sphi %s1069_s0, %s49_s0   ;;  %v1019_v7 = vphi %v1067_v7, %v1624_v7   ;;  %v1015_v6 = vphi %v1065_v6, %v1623_v6   ;;  %v1011_v5 = vphi %v1063_v5, %v1622_v5   ;;  %v1007_v4 = vphi %v1061_v4, %v1621_v4   ;;  %v1003_v3 = vphi %v1059_v3, %v1620_v3   ;;  %v999_v2 = vphi %v1057_v2, %v1619_v2   ;;  %v995_v1 = vphi %v1055_v1, %v1618_v1   ;;  %v991_v0 = vphi %v1053_v0, %v1617_v0  }
   0xf   : > { %1588 = vst [vmem:[#allocation12_spill] sm:$0xff] %v995_v1  ;;  %s59_s21 = sshra.s32 %s791_s1, 3  ;;  %v232_v39 = vunpack.c.l.s4 %v1029_v38  ;;  %s49_s0 = sadd.s32 1, %s1023_s0  }
  0x10   : > { %1589 = vst [vmem:[#allocation13_spill] sm:$0xff] %v999_v2  ;;  %s794_s22 = smul.u32 40, %s59_s21  ;;  %p46_p0 = scmp.ge.s32.totalorder %s49_s0, 16  }
  0x11   : > { %1590 = vst [vmem:[#allocation14_spill] sm:$0xff] %v1003_v3  ;;  %vm724_vm2 = vcmask (%p46_p0), 1041409   ;;  %vm726_vm3 = vcmask (%p46_p0), 1042434   ;;  %vm728_vm4 = vcmask (%p46_p0), 1043459   ;;  %vm730_vm5 = vcmask (%p46_p0), 1044484   ;;  %s1031_s25 = smov (%p46_p0), [#allocation7]  }
  0x12   : > { %1591 = vst [vmem:[#allocation15_spill] sm:$0xff] %v1007_v4  ;;  %s1099_s23 = scalar_lea.vmem [#allocation2], %s794_s22  ;;  %s1130_s24 = scalar_lea.vmem [#allocation5], %s794_s22  ;;  %vm732_vm6 = vcmask (%p46_p0), 1045509   ;;  %vm734_vm7 = vcmask (%p46_p0), 1046534   ;;  %vm736_vm8 = vcmask (%p46_p0), 1047559  }
  0x13   : > { %1592 = vst [vmem:[#allocation16_spill] sm:$0xff] %v1011_v5  ;;  %v64_v8 = vld [vmem:[%s1099_s23] sm:$0xff]  ;;  %v65_v9 = vld [vmem:[%s1099_s23 + $0x8] sm:$0xff]  ;;  %v66_v10 = vld [vmem:[%s1099_s23 + $0x10] sm:$0xff]  ;;  %s745_s26 = sshll.u32 (%p46_p0), %s1031_s25, 4  ;;  %s747_s29 = sshll.u32 (%p46_p0), %s1579_s2, 4  ;;  %s746_s26 = int_to_ptr.vmem [resolvable:$true] %s745_s26  ;;  %s748_s29 = int_to_ptr.hbm [resolvable:$true] %s747_s29 }
  0x14   : > { %1593 = vst [vmem:[#allocation17_spill] sm:$0xff] %v1015_v6  ;;  %v67_v11 = vld [vmem:[%s1099_s23 + $0x18] sm:$0xff]  ;;  %v68_v12 = vld [vmem:[%s1099_s23 + $0x20] sm:$0xff]  ;;  %v1107_v13 = vld [vmem:[%s1099_s23 + $0x28] sm:$0xff] }
  0x15   : > { %1594 = vst [vmem:[#allocation18_spill] sm:$0xff] %v1019_v7  ;;  %v1110_v14 = vld [vmem:[%s1099_s23 + $0x30] sm:$0xff]  ;;  %v1113_v15 = vld [vmem:[%s1099_s23 + $0x38] sm:$0xff]  ;;  %v1116_v16 = vld [vmem:[%s1099_s23 + $0x40] sm:$0xff] }
  0x16   : > { %v1119_v17 = vld [vmem:[%s1099_s23 + $0x48] sm:$0xff]  ;;  %v1122_v18 = vld [vmem:[%s1099_s23 + $0x50] sm:$0xff]  ;;  %v1125_v19 = vld [vmem:[%s1099_s23 + $0x58] sm:$0xff] }
  0x17   : > { %v1128_v20 = vld [vmem:[%s1099_s23 + $0x60] sm:$0xff]  ;;  %v77_v22 = vld [vmem:[%s1099_s23 + $0x68] sm:$0xff]  ;;  %v78_v23 = vld [vmem:[%s1099_s23 + $0x70] sm:$0xff] }
  0x18   : > { %v86_v21 = vld [vmem:[%s1130_s24] sm:$0xff]  ;;  %v79_v24 = vld [vmem:[%s1099_s23 + $0x78] sm:$0xff]  ;;  %v87_v25 = vld [vmem:[%s1130_s24 + $0x8] sm:$0xff] }
  0x19   : > { %v88_v26 = vld [vmem:[%s1130_s24 + $0x10] sm:$0xff]  ;;  %v89_v27 = vld [vmem:[%s1130_s24 + $0x18] sm:$0xff]  ;;  %v106_v28 = vsub.f32 %v86_v21, %v64_v8  ;;  %v80_v29 = vld [vmem:[%s1099_s23 + $0x80] sm:$0xff]  ;;  %v107_v35 = vsub.f32 %v87_v25, %v65_v9 }
  0x1a   : > { %v81_v30 = vld [vmem:[%s1099_s23 + $0x88] sm:$0xff]  ;;  %v82_v31 = vld [vmem:[%s1099_s23 + $0x90] sm:$0xff]  ;;  %v90_v32 = vld [vmem:[%s1130_s24 + $0x20] sm:$0xff]  ;;  %v108_v36 = vsub.f32 %v88_v26, %v66_v10  ;;  %v109_v37 = vsub.f32 %v89_v27, %v67_v11 }
  0x1b   : > { %v91_v33 = vld [vmem:[%s1130_s24 + $0x28] sm:$0xff]  ;;  %v92_v34 = vld [vmem:[%s1130_s24 + $0x30] sm:$0xff]  ;;  %v83_v40 = vld [vmem:[%s1099_s23 + $0x98] sm:$0xff]  ;;  %v110_v44 = vsub.f32 %v90_v32, %v68_v12  ;;  %v1151_v47 = vand.u32 2147483647, %v106_v28 }
  0x1c   : > { %v93_v41 = vld [vmem:[%s1130_s24 + $0x38] sm:$0xff]  ;;  %v94_v42 = vld [vmem:[%s1130_s24 + $0x40] sm:$0xff]  ;;  %v95_v43 = vld [vmem:[%s1130_s24 + $0x48] sm:$0xff]  ;;  %v111_v45 = vsub.f32 %v91_v33, %v1107_v13  ;;  %v112_v46 = vsub.f32 %v92_v34, %v1110_v14  ;;  %v1159_v54 = vand.u32 2147483647, %v107_v35  ;;  %v1207_v34 = vunpack.c.0.s8 %v232_v39 }
  0x1d   : > { %v96_v48 = vld [vmem:[%s1130_s24 + $0x50] sm:$0xff]  ;;  %v97_v49 = vld [vmem:[%s1130_s24 + $0x58] sm:$0xff]  ;;  %v98_v50 = vld [vmem:[%s1130_s24 + $0x60] sm:$0xff]  ;;  %v113_v51 = vsub.f32 %v93_v41, %v1113_v15  ;;  %v114_v52 = vsub.f32 %v94_v42, %v1116_v16  ;;  %v115_v53 = vsub.f32 %v95_v43, %v1119_v17  ;;  %v1167_v61 = vand.u32 2147483647, %v108_v36 }
  0x1e   : > { %v99_v55 = vld [vmem:[%s1130_s24 + $0x68] sm:$0xff]  ;;  %v100_v56 = vld [vmem:[%s1130_s24 + $0x70] sm:$0xff]  ;;  %v101_v57 = vld [vmem:[%s1130_s24 + $0x78] sm:$0xff]  ;;  %v116_v58 = vsub.f32 %v96_v48, %v1122_v18  ;;  %v117_v59 = vsub.f32 %v97_v49, %v1125_v19  ;;  %v118_v60 = vsub.f32 %v98_v50, %v1128_v20  ;;  %v1172_v12 = vand.u32 2147483647, %v109_v37  ;;  %1601 = vst [vmem:[#allocation25_spill] sm:$0xff] %v1207_v34 }
  0x1f   : > { %v102_v62 = vld [vmem:[%s1130_s24 + $0x80] sm:$0xff]  ;;  %v103_v63 = vld [vmem:[%s1130_s24 + $0x88] sm:$0xff]  ;;  %v104_v8 = vld [vmem:[%s1130_s24 + $0x90] sm:$0xff]  ;;  %v119_v9 = vsub.f32 %v99_v55, %v77_v22  ;;  %v120_v10 = vsub.f32 %v100_v56, %v78_v23  ;;  %v121_v11 = vsub.f32 %v101_v57, %v79_v24  ;;  %v1175_v17 = vand.u32 2147483647, %v110_v44 }
  0x20   : > { %v105_v13 = vld [vmem:[%s1130_s24 + $0x98] sm:$0xff]  ;;  %v122_v14 = vsub.f32 %v102_v62, %v80_v29  ;;  %v123_v15 = vsub.f32 %v103_v63, %v81_v30  ;;  %v124_v16 = vsub.f32 %v104_v8, %v82_v31  ;;  %v1177_v19 = vand.u32 2147483647, %v111_v45 }
  0x21   : > { %v125_v18 = vsub.f32 %v105_v13, %v83_v40  ;;  %v1179_v20 = vand.u32 2147483647, %v112_v46  ;;  %v1181_v21 = vand.u32 2147483647, %v113_v51  ;;  %v1183_v25 = vand.u32 2147483647, %v114_v52 }
  0x22   : > { %v1185_v22 = vand.u32 2147483647, %v115_v53  ;;  %v1187_v23 = vand.u32 2147483647, %v116_v58  ;;  %v1189_v24 = vand.u32 2147483647, %v117_v59 }
  0x23   : > { %v1191_v26 = vand.u32 2147483647, %v118_v60  ;;  %v1193_v27 = vand.u32 2147483647, %v119_v9  ;;  %v1195_v28 = vand.u32 2147483647, %v120_v10 }
  0x24   : > { %v1197_v29 = vand.u32 2147483647, %v121_v11  ;;  %v1199_v30 = vand.u32 2147483647, %v122_v14  ;;  %v1201_v31 = vand.u32 2147483647, %v123_v15 }
  0x25   : > { %1595 = vst [vmem:[#allocation19_spill] sm:$0xff] %v1195_v28  ;;  %v1203_v32 = vand.u32 2147483647, %v124_v16  ;;  %v1205_v33 = vand.u32 2147483647, %v125_v18  ;;  %v146_v35 = vmin.f32 %v1151_v47, 1.0 }
  0x26   : > { %1596 = vst [vmem:[#allocation20_spill] sm:$0xff] %v1197_v29  ;;  %v147_v36 = vmin.f32 %v1159_v54, 1.0  ;;  %v148_v37 = vmin.f32 %v1167_v61, 1.0  ;;  %v149_v38 = vmin.f32 %v1172_v12, 1.0  ;;  %v150_v40 = vmin.f32 %v1175_v17, 1.0 }
  0x27   : > { %1597 = vst [vmem:[#allocation21_spill] sm:$0xff] %v1199_v30  ;;  %v151_v41 = vmin.f32 %v1177_v19, 1.0  ;;  %v152_v42 = vmin.f32 %v1179_v20, 1.0  ;;  %v153_v43 = vmin.f32 %v1181_v21, 1.0  ;;  %v154_v44 = vmin.f32 %v1183_v25, 1.0 }
  0x28   : > { %1598 = vst [vmem:[#allocation22_spill] sm:$0xff] %v1201_v31  ;;  %v155_v39 = vmin.f32 %v1185_v22, 1.0  ;;  %v156_v45 = vmin.f32 %v1187_v23, 1.0  ;;  %v157_v46 = vmin.f32 %v1189_v24, 1.0  ;;  %v158_v48 = vmin.f32 %v1191_v26, 1.0 }
  0x29   : > { %1599 = vst [vmem:[#allocation23_spill] sm:$0xff] %v1203_v32  ;;  %v159_v49 = vmin.f32 %v1193_v27, 1.0  ;;  %v160_v50 = vmin.f32 %v1195_v28, 1.0  ;;  %v161_v51 = vmin.f32 %v1197_v29, 1.0  ;;  %v162_v52 = vmin.f32 %v1199_v30, 1.0 }
  0x2a   : > { %1600 = vst [vmem:[#allocation24_spill] sm:$0xff] %v1205_v33  ;;  %v163_v53 = vmin.f32 %v1201_v31, 1.0  ;;  %v164_v55 = vmin.f32 %v1203_v32, 1.0  ;;  %v165_v56 = vmin.f32 %v1205_v33, 1.0  ;;  %v166_v57 = vmul.f32 0.5, %v146_v35 }
  0x2b   : > { %v167_v58 = vmul.f32 0.5, %v147_v36  ;;  %v168_v59 = vmul.f32 0.5, %v148_v37  ;;  %v169_v60 = vmul.f32 0.5, %v149_v38  ;;  %v170_v62 = vmul.f32 0.5, %v150_v40 }
  0x2c   : > { %v171_v63 = vmul.f32 0.5, %v151_v41  ;;  %v172_v8 = vmul.f32 0.5, %v152_v42  ;;  %v173_v9 = vmul.f32 0.5, %v153_v43  ;;  %v174_v10 = vmul.f32 0.5, %v154_v44 }
  0x2d   : > { %v175_v11 = vmul.f32 0.5, %v155_v39  ;;  %v176_v13 = vmul.f32 0.5, %v156_v45  ;;  %v177_v14 = vmul.f32 0.5, %v157_v46  ;;  %v178_v15 = vmul.f32 0.5, %v158_v48 }
  0x2e   : > { %v179_v16 = vmul.f32 0.5, %v159_v49  ;;  %v180_v18 = vmul.f32 0.5, %v160_v50  ;;  %v181_v0 = vmul.f32 0.5, %v161_v51  ;;  %v182_v1 = vmul.f32 0.5, %v162_v52 }
  0x2f   : > { %v183_v2 = vmul.f32 0.5, %v163_v53  ;;  %v184_v3 = vmul.f32 0.5, %v164_v55  ;;  %v185_v4 = vmul.f32 0.5, %v165_v56  ;;  %v186_v5 = vsub.f32 %v1151_v47, %v166_v57 }
  0x30   : > { %v187_v6 = vsub.f32 %v1159_v54, %v167_v58  ;;  %v188_v7 = vsub.f32 %v1167_v61, %v168_v59  ;;  %v189_v34 = vsub.f32 %v1172_v12, %v169_v60  ;;  %v190_v33 = vsub.f32 %v1175_v17, %v170_v62  ;;  %v1602_v17 = vld [vmem:[#allocation19_spill] sm:$0xff] }
  0x31   : > { %v191_v32 = vsub.f32 %v1177_v19, %v171_v63  ;;  %v192_v31 = vsub.f32 %v1179_v20, %v172_v8  ;;  %v193_v30 = vsub.f32 %v1181_v21, %v173_v9  ;;  %v194_v29 = vsub.f32 %v1183_v25, %v174_v10  ;;  %v1603_v19 = vld [vmem:[#allocation20_spill] sm:$0xff]  ;;  %v1604_v20 = vld [vmem:[#allocation21_spill] sm:$0xff]  ;;  %v1605_v21 = vld [vmem:[#allocation22_spill] sm:$0xff] }
  0x32   : > { %v195_v28 = vsub.f32 %v1185_v22, %v175_v11  ;;  %v196_v47 = vsub.f32 %v1187_v23, %v176_v13  ;;  %v197_v54 = vsub.f32 %v1189_v24, %v177_v14  ;;  %v198_v61 = vsub.f32 %v1191_v26, %v178_v15  ;;  %v1606_v62 = vld [vmem:[#allocation23_spill] sm:$0xff]  ;;  %v1607_v63 = vld [vmem:[#allocation24_spill] sm:$0xff] }
  0x33   : > { %v199_v12 = vsub.f32 %v1193_v27, %v179_v16  ;;  %v200_v57 = vsub.f32 %v1602_v17, %v180_v18  ;;  %v201_v58 = vsub.f32 %v1603_v19, %v181_v0  ;;  %v202_v59 = vsub.f32 %v1604_v20, %v182_v1 }
  0x34   : > { %v203_v60 = vsub.f32 %v1605_v21, %v183_v2  ;;  %v204_v25 = vsub.f32 %v1606_v62, %v184_v3  ;;  %v205_v22 = vsub.f32 %v1607_v63, %v185_v4  ;;  %v206_v8 = vmul.f32 %v186_v5, %v146_v35 }
  0x35   : > { %v207_v23 = vmul.f32 %v187_v6, %v147_v36  ;;  %v208_v9 = vmul.f32 %v188_v7, %v148_v37  ;;  %v209_v24 = vmul.f32 %v189_v34, %v149_v38  ;;  %v210_v10 = vmul.f32 %v190_v33, %v150_v40  ;;  %v1608_v37 = vld [vmem:[#allocation25_spill] sm:$0xff] }
  0x36   : > { %v1249_v26 = vmul.f32 %v191_v32, %v151_v41  ;;  %v1251_v27 = vmul.f32 %v192_v31, %v152_v42  ;;  %v1253_v11 = vmul.f32 %v193_v30, %v153_v43  ;;  %v1255_v0 = vmul.f32 %v194_v29, %v154_v44 }
  0x37   : > { %v1257_v1 = vmul.f32 %v195_v28, %v155_v39  ;;  %v1259_v2 = vmul.f32 %v196_v47, %v156_v45  ;;  %v1261_v3 = vmul.f32 %v197_v54, %v157_v46  ;;  %v1263_v4 = vmul.f32 %v198_v61, %v158_v48 }
  0x38   : > { %v1265_v5 = vmul.f32 %v199_v12, %v159_v49  ;;  %v1267_v6 = vmul.f32 %v200_v57, %v160_v50  ;;  %v1269_v7 = vmul.f32 %v201_v58, %v161_v51  ;;  %v1271_v31 = vmul.f32 %v202_v59, %v162_v52 }
  0x39   : > { %v1273_v30 = vmul.f32 %v203_v60, %v163_v53  ;;  %v1275_v29 = vmul.f32 %v204_v25, %v164_v55  ;;  %v1277_v28 = vmul.f32 %v205_v22, %v165_v56  ;;  %v226_v32 = vrot.slane %v208_v9, 4 }
  0x3a   : > { %v229_v33 = vrot.slane %v206_v8, 4  ;;  %v239_v34 = vrot.slane %v209_v24, 4  ;;  %v241_v35 = vrot.slane %v207_v23, 4  ;;  %v251_v36 = vrot.slane %v210_v10, 4 }
  0x3b   : > { %v256_v38 = vperm.slane %v210_v10, %v1608_v37  ;;  %v321_v40 = vrot.slane %v1253_v11, 4  ;;  %v228_v41 = vsel %vm227_vm0, %v226_v32, %v206_v8  ;;  %v1030_v50 = vmov 1934713408  }
  0x3c   : > { %v230_v42 = vsel %vm227_vm0, %v208_v9, %v229_v33  ;;  %v240_v43 = vsel %vm227_vm0, %v239_v34, %v207_v23  ;;  %v242_v44 = vsel %vm227_vm0, %v209_v24, %v241_v35  ;;  %v234_v39 = vperm.slane %v228_v41, %v1608_v37 }
  0x3d   : > { %v238_v45 = vperm.slane %v230_v42, %v1608_v37  ;;  %v246_v46 = vperm.slane %v240_v43, %v1608_v37  ;;  %v250_v48 = vperm.slane %v242_v44, %v1608_v37  ;;  %v252_v49 = vsel %vm227_vm0, 0.0, %v251_v36 }
  0x3e   : > { %v266_v51 = vunpack.c.l.s4 %v1030_v50  ;;  %v285_v52 = vrot.slane %v256_v38, 4  ;;  %v322_v53 = vsel %vm227_vm0, %v321_v40, %v1249_v26  ;;  %v260_v55 = vperm.slane %v252_v49, %v1608_v37 }
  0x3f   : > { %v261_v56 = vrot.slane %v246_v46, 4  ;;  %v263_v13 = vrot.slane %v234_v39, 4  ;;  %v273_v14 = vrot.slane %v250_v48, 4  ;;  %v275_v16 = vrot.slane %v238_v45, 4 }
  0x40   : > { %v1293_v15 = vunpack.c.0.s8 %v266_v51  ;;  %v286_v18 = vsel %vm227_vm0, 0.0, %v285_v52  ;;  %v323_v47 = vrot.slane %v1249_v26, 4  ;;  %v295_v17 = vrot.slane %v260_v55, 4 }
  0x41   : > { %v262_v54 = vsel %vm227_vm0, %v261_v56, %v234_v39  ;;  %v264_v61 = vsel %vm227_vm0, %v246_v46, %v263_v13  ;;  %v274_v12 = vsel %vm227_vm0, %v273_v14, %v238_v45  ;;  %v276_v58 = vsel %vm227_vm0, %v250_v48, %v275_v16 }
  0x42   : > { %v268_v57 = vperm.slane %v262_v54, %v1293_v15  ;;  %v272_v19 = vperm.slane %v264_v61, %v1293_v15  ;;  %v280_v20 = vperm.slane %v274_v12, %v1293_v15  ;;  %v284_v59 = vperm.slane %v276_v58, %v1293_v15 }
  0x43   : > { %v290_v21 = vperm.slane %v256_v38, %v1293_v15  ;;  %v294_v60 = vperm.slane %v286_v18, %v1293_v15  ;;  %v296_v62 = vsel %vm227_vm0, 0.0, %v295_v17  ;;  %v300_v25 = vperm.slane %v260_v55, %v1293_v15 }
  0x44   : > { %v304_v63 = vperm.slane %v296_v62, %v1293_v15  ;;  %v307_v22 = vrot.slane %v268_v57, 4  ;;  %v311_v8 = vrot.slane %v272_v19, 4  ;;  %v315_v24 = vrot.slane %v280_v20, 4 }
  0x45   : > { %v305_v23 = vrot.slane %v290_v21, 4  ;;  %v309_v9 = vrot.slane %v294_v60, 4  ;;  %v319_v10 = vrot.slane %v284_v59, 4  ;;  %v313_v33 = vrot.slane %v300_v25, 4 }
  0x46   : > { %v1311_v26 = vsel %vm227_vm0, %v290_v21, %v307_v22  ;;  %v1314_v32 = vsel %vm227_vm0, %v294_v60, %v311_v8  ;;  %v317_v34 = vrot.slane %v304_v63, 4  ;;  %v1323_v38 = vsel %vm227_vm0, %v300_v25, %v315_v24 }
  0x47   : > { %v1317_v35 = vsel %vm227_vm0, %v305_v23, %v268_v57  ;;  %v1320_v36 = vsel %vm227_vm0, %v309_v9, %v272_v19  ;;  %v1326_v40 = vsel %vm227_vm0, %v304_v63, %v319_v10  ;;  %v1329_v41 = vsel %vm227_vm0, %v313_v33, %v280_v20 }
  0x48   : > { %v1332_v42 = vsel %vm227_vm0, %v317_v34, %v284_v59  ;;  %v324_v43 = vsel %vm227_vm0, %v1253_v11, %v323_v47  ;;  %v328_v44 = vperm.slane %v322_v53, %v1608_v37  ;;  %v333_v45 = vrot.slane %v1255_v0, 4 }
  0x49   : > { %v332_v39 = vperm.slane %v324_v43, %v1608_v37  ;;  %v335_v46 = vrot.slane %v1251_v27, 4  ;;  %v345_v48 = vrot.slane %v1257_v1, 4  ;;  %v350_v49 = vperm.slane %v1257_v1, %v1608_v37 }
  0x4a   : > { %v357_v50 = vrot.slane %v328_v44, 4  ;;  %v415_v51 = vrot.slane %v1263_v4, 4  ;;  %v417_v52 = vrot.slane %v1259_v2, 4  ;;  %v334_v11 = vsel %vm227_vm0, %v333_v45, %v1251_v27 }
  0x4b   : > { %v336_v53 = vsel %vm227_vm0, %v1255_v0, %v335_v46  ;;  %v346_v55 = vsel %vm227_vm0, 0.0, %v345_v48  ;;  %v369_v56 = vrot.slane %v332_v39, 4  ;;  %v340_v13 = vperm.slane %v334_v11, %v1608_v37 }
  0x4c   : > { %v344_v14 = vperm.slane %v336_v53, %v1608_v37  ;;  %v354_v1 = vperm.slane %v346_v55, %v1608_v37  ;;  %v379_v16 = vrot.slane %v350_v49, 4  ;;  %v384_v18 = vperm.slane %v350_v49, %v1293_v15 }
  0x4d   : > { %v416_v47 = vsel %vm227_vm0, %v415_v51, %v1259_v2  ;;  %v418_v27 = vsel %vm227_vm0, %v1263_v4, %v417_v52  ;;  %v427_v0 = vrot.slane %v1265_v5, 4  ;;  %v355_v54 = vrot.slane %v340_v13, 4 }
  0x4e   : > { %v358_v61 = vsel %vm227_vm0, %v340_v13, %v357_v50  ;;  %v367_v12 = vrot.slane %v344_v14, 4  ;;  %v370_v17 = vsel %vm227_vm0, %v344_v14, %v369_v56  ;;  %v380_v58 = vsel %vm227_vm0, 0.0, %v379_v16 }
  0x4f   : > { %v366_v57 = vperm.slane %v358_v61, %v1293_v15  ;;  %v378_v19 = vperm.slane %v370_v17, %v1293_v15  ;;  %v389_v20 = vrot.slane %v354_v1, 4  ;;  %v356_v2 = vsel %vm227_vm0, %v355_v54, %v328_v44 }
  0x50   : > { %v368_v59 = vsel %vm227_vm0, %v367_v12, %v332_v39  ;;  %v388_v4 = vperm.slane %v380_v58, %v1293_v15  ;;  %v394_v21 = vperm.slane %v354_v1, %v1293_v15  ;;  %v362_v60 = vperm.slane %v356_v2, %v1293_v15 }
  0x51   : > { %v374_v62 = vperm.slane %v368_v59, %v1293_v15  ;;  %v390_v25 = vsel %vm227_vm0, 0.0, %v389_v20  ;;  %v399_v63 = vrot.slane %v384_v18, 4  ;;  %v405_v23 = vrot.slane %v366_v57, 4 }
  0x52   : > { %v398_v22 = vperm.slane %v390_v25, %v1293_v15  ;;  %v403_v8 = vrot.slane %v388_v4, 4  ;;  %v407_v9 = vrot.slane %v394_v21, 4  ;;  %v401_v10 = vrot.slane %v362_v60, 4 }
  0x53   : > { %v1373_v24 = vsel %vm227_vm0, %v399_v63, %v362_v60  ;;  %v409_v33 = vrot.slane %v374_v62, 4  ;;  %v413_v34 = vrot.slane %v378_v19, 4  ;;  %v1379_v44 = vsel %vm227_vm0, %v388_v4, %v405_v23 }
  0x54   : > { %v1376_v43 = vsel %vm227_vm0, %v403_v8, %v366_v57  ;;  %v1382_v39 = vsel %vm227_vm0, %v407_v9, %v374_v62  ;;  %v411_v45 = vrot.slane %v398_v22, 4  ;;  %v1385_v46 = vsel %vm227_vm0, %v384_v18, %v401_v10 }
  0x55   : > { %v1388_v48 = vsel %vm227_vm0, %v394_v21, %v409_v33  ;;  %v1391_v49 = vsel %vm227_vm0, %v398_v22, %v413_v34  ;;  %v422_v50 = vperm.slane %v416_v47, %v1608_v37  ;;  %v426_v52 = vperm.slane %v418_v27, %v1608_v37 }
  0x56   : > { %v1395_v51 = vsel %vm227_vm0, %v411_v45, %v378_v19  ;;  %v428_v11 = vsel %vm227_vm0, %v427_v0, %v1261_v3  ;;  %v429_v53 = vrot.slane %v1261_v3, 4  ;;  %v439_v56 = vrot.slane %v1267_v6, 4 }
  0x57   : > { %v434_v55 = vperm.slane %v428_v11, %v1608_v37  ;;  %v444_v13 = vperm.slane %v1267_v6, %v1608_v37  ;;  %v451_v14 = vrot.slane %v422_v50, 4  ;;  %v463_v16 = vrot.slane %v426_v52, 4 }
  0x58   : > { %v430_v1 = vsel %vm227_vm0, %v1265_v5, %v429_v53  ;;  %v509_v18 = vrot.slane %v1273_v30, 4  ;;  %v511_v47 = vrot.slane %v1269_v7, 4  ;;  %v440_v3 = vsel %vm227_vm0, 0.0, %v439_v56 }
  0x59   : > { %v438_v27 = vperm.slane %v430_v1, %v1608_v37  ;;  %v449_v0 = vrot.slane %v434_v55, 4  ;;  %v452_v54 = vsel %vm227_vm0, %v434_v55, %v451_v14  ;;  %v448_v61 = vperm.slane %v440_v3, %v1608_v37 }
  0x5a   : > { %v460_v6 = vperm.slane %v452_v54, %v1293_v15  ;;  %v473_v12 = vrot.slane %v444_v13, 4  ;;  %v478_v17 = vperm.slane %v444_v13, %v1293_v15  ;;  %v510_v58 = vsel %vm227_vm0, %v509_v18, %v1269_v7 }
  0x5b   : > { %v450_v5 = vsel %vm227_vm0, %v449_v0, %v422_v50  ;;  %v461_v57 = vrot.slane %v438_v27, 4  ;;  %v464_v19 = vsel %vm227_vm0, %v438_v27, %v463_v16  ;;  %v483_v4 = vrot.slane %v448_v61, 4 }
  0x5c   : > { %v456_v20 = vperm.slane %v450_v5, %v1293_v15  ;;  %v472_v2 = vperm.slane %v464_v19, %v1293_v15  ;;  %v474_v59 = vsel %vm227_vm0, 0.0, %v473_v12  ;;  %v488_v62 = vperm.slane %v448_v61, %v1293_v15 }
  0x5d   : > { %v462_v21 = vsel %vm227_vm0, %v461_v57, %v426_v52  ;;  %v482_v60 = vperm.slane %v474_v59, %v1293_v15  ;;  %v493_v25 = vrot.slane %v478_v17, 4  ;;  %v484_v22 = vsel %vm227_vm0, 0.0, %v483_v4 }
  0x5e   : > { %v468_v63 = vperm.slane %v462_v21, %v1293_v15  ;;  %v495_v8 = vrot.slane %v456_v20, 4  ;;  %v499_v7 = vrot.slane %v460_v6, 4  ;;  %v492_v23 = vperm.slane %v484_v22, %v1293_v15 }
  0x5f   : > { %v494_v9 = vsel %vm227_vm0, %v493_v25, %v456_v20  ;;  %v497_v10 = vrot.slane %v482_v60, 4  ;;  %v501_v33 = vrot.slane %v488_v62, 4  ;;  %v507_v52 = vrot.slane %v472_v2, 4 }
  0x60   : > { %v1430_v34 = vsel %vm227_vm0, %v478_v17, %v495_v8  ;;  %v1433_v45 = vsel %vm227_vm0, %v482_v60, %v499_v7  ;;  %v503_v50 = vrot.slane %v468_v63, 4  ;;  %v505_v55 = vrot.slane %v492_v23, 4 }
  0x61   : > { %v1436_v11 = vsel %vm227_vm0, %v497_v10, %v460_v6  ;;  %v1439_v53 = vsel %vm227_vm0, %v501_v33, %v468_v63  ;;  %v512_v56 = vsel %vm227_vm0, %v1273_v30, %v511_v47  ;;  %v1447_v14 = vsel %vm227_vm0, %v492_v23, %v507_v52 }
  0x62   : > { %v1444_v13 = vsel %vm227_vm0, %v488_v62, %v503_v50  ;;  %v516_v1 = vperm.slane %v510_v58, %v1608_v37  ;;  %v520_v16 = vperm.slane %v512_v56, %v1608_v37  ;;  %v1452_v18 = vsel %vm227_vm0, %v505_v55, %v472_v2 }
  0x63   : > { %v521_v27 = vrot.slane %v1275_v29, 4  ;;  %v523_v3 = vrot.slane %v1271_v31, 4  ;;  %v533_v0 = vrot.slane %v1277_v28, 4  ;;  %v538_v30 = vperm.slane %v1277_v28, %v1608_v37 }
  0x64   : > { %v545_v47 = vrot.slane %v516_v1, 4  ;;  %v557_v54 = vrot.slane %v520_v16, 4  ;;  %v604_v17 = vsel %vm603_vm1, %v1317_v35, 0.0  ;;  %v607_v20 = vsel %vm603_vm1, %v494_v9, 0.0 }
  0x65   : > { %v522_v61 = vsel %vm227_vm0, %v521_v27, %v1271_v31  ;;  %v524_v6 = vsel %vm227_vm0, %v1275_v29, %v523_v3  ;;  %v534_v12 = vsel %vm227_vm0, 0.0, %v533_v0  ;;  %v567_v19 = vrot.slane %v538_v30, 4 }
  0x66   : > { %v528_v5 = vperm.slane %v522_v61, %v1608_v37  ;;  %v532_v57 = vperm.slane %v524_v6, %v1608_v37  ;;  %v542_v28 = vperm.slane %v534_v12, %v1608_v37  ;;  %v572_v58 = vperm.slane %v538_v30, %v1293_v15 }
  0x67   : > { %v605_v31 = vsel %vm603_vm1, %v1373_v24, 0.0  ;;  %v617_v29 = vsel %vm603_vm1, %v1311_v26, 0.0  ;;  %v568_v60 = vsel %vm227_vm0, 0.0, %v567_v19  ;;  %v618_v12 = vsel %vm603_vm1, %v1385_v46, 0.0 }
  0x68   : > { %v543_v2 = vrot.slane %v528_v5, 4  ;;  %v546_v35 = vsel %vm227_vm0, %v528_v5, %v545_v47  ;;  %v555_v59 = vrot.slane %v532_v57, 4  ;;  %v558_v4 = vsel %vm227_vm0, %v532_v57, %v557_v54 }
  0x69   : > { %v554_v21 = vperm.slane %v546_v35, %v1293_v15  ;;  %v566_v37 = vperm.slane %v558_v4, %v1293_v15  ;;  %v577_v62 = vrot.slane %v542_v28, 4  ;;  %v576_v63 = vperm.slane %v568_v60, %v1293_v15 }
  0x6a   : > { %v544_v24 = vsel %vm227_vm0, %v543_v2, %v516_v1  ;;  %v556_v25 = vsel %vm227_vm0, %v555_v59, %v520_v16  ;;  %v582_v26 = vperm.slane %v542_v28, %v1293_v15  ;;  %v587_v23 = vrot.slane %v572_v58, 4 }
  0x6b   : > { %v550_v22 = vperm.slane %v544_v24, %v1293_v15  ;;  %v562_v8 = vperm.slane %v556_v25, %v1293_v15  ;;  %v578_v7 = vsel %vm227_vm0, 0.0, %v577_v62  ;;  %v591_v10 = vrot.slane %v576_v63, 4 }
  0x6c   : > { %v586_v9 = vperm.slane %v578_v7, %v1293_v15  ;;  %v593_v33 = vrot.slane %v554_v21, 4  ;;  %v595_v50 = vrot.slane %v582_v26, 4  ;;  %v601_v1 = vrot.slane %v566_v37, 4 }
  0x6d   : > { %v588_v52 = vsel %vm227_vm0, %v587_v23, %v550_v22  ;;  %v589_v55 = vrot.slane %v550_v22, 4  ;;  %v597_v56 = vrot.slane %v562_v8, 4  ;;  %v592_v16 = vsel %vm227_vm0, %v591_v10, %v554_v21 }
  0x6e   : > { %v594_v27 = vsel %vm227_vm0, %v576_v63, %v593_v33  ;;  %v596_v3 = vsel %vm227_vm0, %v595_v50, %v562_v8  ;;  %v599_v0 = vrot.slane %v586_v9, 4  ;;  %v1495_v15 = vsel %vm227_vm0, %v586_v9, %v601_v1 }
  0x6f   : > { %v590_v30 = vsel %vm227_vm0, %v572_v58, %v589_v55  ;;  %v598_v47 = vsel %vm227_vm0, %v582_v26, %v597_v56  ;;  %v606_v54 = vadd.f32 %v605_v31, %v604_v17  ;;  %v609_v6 = vsel %vm603_vm1, %v588_v52, 0.0 }
  0x70   : > { %v600_v61 = vsel %vm227_vm0, %v599_v0, %v566_v37  ;;  %v620_v5 = vsel %vm603_vm1, %v1430_v34, 0.0  ;;  %v619_v28 = vadd.f32 %v618_v12, %v617_v29  ;;  %v622_v19 = vsel %vm603_vm1, %v590_v30, 0.0 }
  0x71   : > { %v608_v57 = vadd.f32 %v607_v20, %v606_v54  ;;  %v630_v58 = vsel %vm603_vm1, %v1320_v36, 0.0  ;;  %v631_v17 = vsel %vm603_vm1, %v1376_v43, 0.0  ;;  %v633_v31 = vsel %vm603_vm1, %v1436_v11, 0.0 }
  0x72   : > { %v635_v2 = vsel %vm603_vm1, %v592_v16, 0.0  ;;  %v643_v46 = vsel %vm603_vm1, %v1314_v32, 0.0  ;;  %v621_v34 = vadd.f32 %v620_v5, %v619_v28  ;;  %v632_v20 = vadd.f32 %v631_v17, %v630_v58 }
  0x73   : > { %v610_v35 = vadd.f32 %v609_v6, %v608_v57  ;;  %v644_v29 = vsel %vm603_vm1, %v1379_v44, 0.0  ;;  %v646_v36 = vsel %vm603_vm1, %v1433_v45, 0.0  ;;  %v648_v43 = vsel %vm603_vm1, %v594_v27, 0.0 }
  0x74   : > { %v645_v59 = vadd.f32 %v644_v29, %v643_v46  ;;  %v656_v11 = vsel %vm603_vm1, %v1329_v41, 0.0  ;;  %v623_v21 = vadd.f32 %v622_v19, %v621_v34  ;;  %v634_v37 = vadd.f32 %v633_v31, %v632_v20 }
  0x75   : > { %v611_v4 = vrot.slane %v610_v35, 4  ;;  %v657_v32 = vsel %vm603_vm1, %v1382_v39, 0.0  ;;  %v659_v44 = vsel %vm603_vm1, %v1439_v53, 0.0  ;;  %v661_v24 = vsel %vm603_vm1, %v596_v3, 0.0 }
  0x76   : > { %v647_v60 = vadd.f32 %v646_v36, %v645_v59  ;;  %v658_v62 = vadd.f32 %v657_v32, %v656_v11  ;;  %v624_v45 = vrot.slane %v623_v21, 4  ;;  %v636_v63 = vadd.f32 %v635_v2, %v634_v37 }
  0x77   : > { %v612_v25 = vadd.f32 %v611_v4, %v610_v35  ;;  %v669_v26 = vsel %vm603_vm1, %v1323_v38, 0.0  ;;  %v670_v8 = vsel %vm603_vm1, %v1388_v48, 0.0  ;;  %v672_v39 = vsel %vm603_vm1, %v1444_v13, 0.0 }
  0x78   : > { %v649_v41 = vadd.f32 %v648_v43, %v647_v60  ;;  %v660_v22 = vadd.f32 %v659_v44, %v658_v62  ;;  %v625_v23 = vadd.f32 %v624_v45, %v623_v21  ;;  %v637_v9 = vrot.slane %v636_v63, 4  ;;  %v1609_v60 = vld [vmem:[#allocation18_spill] sm:$0xff] }
  0x79   : > { %v613_v7 = vrot.slane %v612_v25, 2  ;;  %v671_v53 = vadd.f32 %v670_v8, %v669_v26  ;;  %v674_v50 = vsel %vm603_vm1, %v598_v47, 0.0  ;;  %v682_v52 = vsel %vm603_vm1, %v1332_v42, 0.0 }
  0x7a   : > { %v650_v10 = vrot.slane %v649_v41, 4  ;;  %v662_v33 = vadd.f32 %v661_v24, %v660_v22  ;;  %v626_v55 = vrot.slane %v625_v23, 2  ;;  %v638_v56 = vadd.f32 %v637_v9, %v636_v63  ;;  %v1611_v24 = vld [vmem:[#allocation16_spill] sm:$0xff] }
  0x7b   : > { %v614_v38 = vadd.f32 %v613_v7, %v612_v25  ;;  %v673_v1 = vadd.f32 %v672_v39, %v671_v53  ;;  %v683_v13 = vsel %vm603_vm1, %v1395_v51, 0.0  ;;  %v685_v27 = vsel %vm603_vm1, %v1452_v18, 0.0 }
  0x7c   : > { %v651_v16 = vadd.f32 %v650_v10, %v649_v41  ;;  %v663_v48 = vrot.slane %v662_v33, 4  ;;  %v627_v0 = vadd.f32 %v626_v55, %v625_v23  ;;  %v639_v30 = vrot.slane %v638_v56, 2  ;;  %v1612_v41 = vld [vmem:[#allocation15_spill] sm:$0xff]  ;;  %v1614_v10 = vld [vmem:[#allocation13_spill] sm:$0xff] }
  0x7d   : > { %v615_v3 = vrot.slane %v614_v38, 1  ;;  %v675_v54 = vadd.f32 %v674_v50, %v673_v1  ;;  %v684_v12 = vadd.f32 %v683_v13, %v682_v52  ;;  %v687_v42 = vsel %vm603_vm1, %v600_v61, 0.0  ;;  %v1615_v1 = vld [vmem:[#allocation12_spill] sm:$0xff]  ;;  %v1616_v13 = vld [vmem:[#allocation11_spill] sm:$0xff] }
  0x7e   : > { %v652_v47 = vrot.slane %v651_v16, 2  ;;  %v664_v6 = vadd.f32 %v663_v48, %v662_v33  ;;  %v628_v57 = vrot.slane %v627_v0, 1  ;;  %v640_v28 = vadd.f32 %v639_v30, %v638_v56 }
  0x7f   : > { %v616_v5 = vadd.f32 %v615_v3, %v614_v38  ;;  %v676_v19 = vrot.slane %v675_v54, 4  ;;  %v686_v31 = vadd.f32 %v685_v27, %v684_v12  ;;  %v695_v51 = vsel %vm603_vm1, %v1326_v40, 0.0 }
  0x80   : > { %v653_v58 = vadd.f32 %v652_v47, %v651_v16  ;;  %v665_v17 = vrot.slane %v664_v6, 2  ;;  %v629_v18 = vadd.f32 %v628_v57, %v627_v0  ;;  %v641_v2 = vrot.slane %v640_v28, 1 }
  0x81   : > { %v677_v46 = vadd.f32 %v676_v19, %v675_v54  ;;  %v696_v35 = vsel %vm603_vm1, %v1391_v49, 0.0  ;;  %v688_v29 = vadd.f32 %v687_v42, %v686_v31  ;;  %v698_v43 = vsel %vm603_vm1, %v1447_v14, 0.0  ;;  %v1610_v49 = vld [vmem:[#allocation17_spill] sm:$0xff] }
  0x82   : > { %v654_v34 = vrot.slane %v653_v58, 1  ;;  %v666_v20 = vadd.f32 %v665_v17, %v664_v6  ;;  %v697_v61 = vadd.f32 %v696_v35, %v695_v51  ;;  %v642_v59 = vadd.f32 %v641_v2, %v640_v28 }
  0x83   : > { %v678_v36 = vrot.slane %v677_v46, 2  ;;  %v700_v11 = vsel %vm603_vm1, %v1495_v15, 0.0  ;;  %v689_v21 = vrot.slane %v688_v29, 4  ;;  %v708_v62 = vadd.f32 %v1609_v60, %v616_v5   ;;  %v1613_v15 = vld [vmem:[#allocation14_spill] sm:$0xff] }
  0x84   : > { %v655_v4 = vadd.f32 %v654_v34, %v653_v58  ;;  %v667_v40 = vrot.slane %v666_v20, 1  ;;  %v699_v37 = vadd.f32 %v698_v43, %v697_v61  ;;  %v709_v44 = vadd.f32 %v1610_v49, %v629_v18  }
  0x85   : > { %v679_v32 = vadd.f32 %v678_v36, %v677_v46  ;;  %v710_v25 = vadd.f32 %v1611_v24, %v642_v59   ;;  %v690_v63 = vadd.f32 %v689_v21, %v688_v29 }
  0x86   : > { %v668_v45 = vadd.f32 %v667_v40, %v666_v20  ;;  %v701_v26 = vadd.f32 %v700_v11, %v699_v37  ;;  %v711_v22 = vadd.f32 %v1612_v41, %v655_v4   ;;  %v1623_v6 = vmov %v709_v44 }
  0x87   : > { %v680_v14 = vrot.slane %v679_v32, 1  ;;  %v691_v8 = vrot.slane %v690_v63, 2  ;;  %v1622_v5 = vmov %v710_v25  ;;  %v725_v30 = vsel (%p46_p0), %vm724_vm2, %v709_v44, %v708_v62 }
  0x88   : > { %v702_v39 = vrot.slane %v701_v26, 4  ;;  %v712_v23 = vadd.f32 %v1613_v15, %v668_v45   ;;  %v1621_v4 = vmov %v711_v22  ;;  %v727_v54 = vsel (%p46_p0), %vm726_vm3, %v710_v25, %v725_v30 }
  0x89   : > { %v681_v7 = vadd.f32 %v680_v14, %v679_v32  ;;  %v692_v9 = vadd.f32 %v691_v8, %v690_v63  ;;  %v729_v47 = vsel (%p46_p0), %vm728_vm4, %v711_v22, %v727_v54 }
  0x8a   : > { %v703_v53 = vadd.f32 %v702_v39, %v701_v26  ;;  %v1620_v3 = vmov %v712_v23  ;;  %v731_v12 = vsel (%p46_p0), %vm730_vm5, %v712_v23, %v729_v47 }
  0x8b   : > { %v713_v33 = vadd.f32 %v1614_v10, %v681_v7   ;;  %v693_v50 = vrot.slane %v692_v9, 1  ;;  %v1624_v7 = vmov %v708_v62 }
  0x8c   : > { %v704_v52 = vrot.slane %v703_v53, 2 }
  0x8d   : > { %v694_v38 = vadd.f32 %v693_v50, %v692_v9  ;;  %v1619_v2 = vmov %v713_v33  ;;  %v733_v42 = vsel (%p46_p0), %vm732_vm6, %v713_v33, %v731_v12 }
  0x8e   : > { %v705_v55 = vadd.f32 %v704_v52, %v703_v53 }
  0x8f   : > { %v714_v16 = vadd.f32 %v1615_v1, %v694_v38  }
  0x90   : > { %v706_v56 = vrot.slane %v705_v55, 1 }
  0x91   : > { %v1618_v1 = vmov %v714_v16  ;;  %v735_v57 = vsel (%p46_p0), %vm734_vm7, %v714_v16, %v733_v42 }
  0x92   : > { %v707_v48 = vadd.f32 %v706_v56, %v705_v55  ;;  %48 = sbr.rel (!%p46_p0) target bundleno = 14 (0xe), region = 45 }
  0x94   : > { %v715_v27 = vadd.f32 %v1616_v13, %v707_v48  }
  0x96   : > { %v1617_v0 = vmov %v715_v27  ;;  %v737_v3 = vsel (%p46_p0), %vm736_vm8, %v715_v27, %v735_v57 }
  0x97   :  { %739 = vst [vmem:[#allocation7] sm:$0xff] %v737_v3 }
  0x98   :  { %750 = dma.vmem_to_hbm [thread:$0]  %s746_s26, 128, %s748_s29, [#allocation4]  }
  0x99   :  { %987 = dma.done.wait [#allocation4], 128  }
  0x9a   :  { %988 = vsyncadd [#allocation4], 4294967168 }
  0x9b   :  { %755 = vsyncpa [#allocation3], 1 }
  0x9c   :  { %756 = vsyncpa [#allocation6], 1 }
  0x9d   :  { %757 = vsyncpa [#allocation4], 1 }

</bundles_post_ra>
